<compile_context>
chip_gen: v6e
topology: v6e:2x2x1
jax: 0.10.0
libtpu: 0.0.40
codegen_flags: <defaults>
</compile_context>

<pallas_src>
import numpy as np
import jax
import jax.numpy as jnp
from jax import lax
from jax.experimental import pallas as pl
from jax.experimental.pallas import tpu as pltpu

_LANES = 128
# Per-f32-temporary byte budget for one in-kernel chunk (bounds chunk VMEM temporaries).
_CHUNK_TEMP_BYTES = 512 * 1024
_CHUNK_VMEM_RESERVE = 6 * 1024 * 1024   # chunk temps + accumulators + misc slack


# --------------------------------------------------------------------------- hw queries / sizing

def _vmem_capacity():
    """Per-core VMEM capacity (bytes); conservative 64 MiB (v7x) fallback."""
    try:
        cap = int(pltpu.get_tpu_info().vmem_capacity_bytes)
        if cap > 0:
            return cap
    except Exception:
        pass
    return 64 * 1024 * 1024


def _chunk_sublanes(S, tb):
    """Static chunk length (sublanes) for the in-kernel passes.

    Invariant: whenever more than one chunk is needed, the chunk length is a multiple of 32
    sublanes, so dynamic sublane offsets stay aligned to the native (32,128) int8 tiling
    (and therefore to the f32 (8,128) and bf16 (16,128) tilings too).
    """
    if S <= 32:
        return int(S)
    ch = _CHUNK_TEMP_BYTES // (tb * _LANES * 4)
    ch = max(32, (ch // 32) * 32)
    return int(min(ch, S))


def _choose_tb(B, n_px, io_bytes_px, vmem_cap):
    """Largest divisor of B s.t. the double-buffered VMEM working set fits, the HBM bytes per
    grid step stay pipeline-friendly, and the grid keeps >= 2 steps whenever B >= 2 (v7x)."""
    vmem_target = min(int(vmem_cap * 0.7), 96 * 1024 * 1024)
    per_b_vmem = 2 * n_px * io_bytes_px                      # 2x: Pallas double buffering
    cap = max(1, (vmem_target - _CHUNK_VMEM_RESERVE) // max(1, per_b_vmem))
    # HBM bytes per step: long enough to amortize ~0.35us/step, short enough to pipeline.
    step_cap = (16 << 20) if vmem_cap >= (100 << 20) else (8 << 20)
    cap = min(cap, max(1, step_cap // max(1, n_px * io_bytes_px)))
    if B > 1:
        cap = min(cap, (B + 1) // 2)                         # >= 2 grid steps for both v7x TCs
    cap = max(1, min(cap, B))
    for d in range(int(cap), 0, -1):
        if B % d == 0:
            return d
    return 1


def _compiler_params(tb, n_px, io_bytes_px, vmem_cap):
    """vmem_limit sized from the *VMEM* working set (not HBM step bytes)."""
    ws = 2 * tb * n_px * io_bytes_px + _CHUNK_VMEM_RESERVE
    lim = max(32 << 20, int(ws * 1.25))
    lim = min(lim, max(32 << 20, min(int(vmem_cap) - (8 << 20), 100 << 20)))
    return pltpu.CompilerParams(dimension_semantics=("parallel",),
                                vmem_limit_bytes=int(lim))


# --------------------------------------------------------------------------- in-kernel helpers

def _fold_chunks(S, CH, body, init):
    """carry = body(start, size, carry) over sublanes [0, S) in CH-sized chunks (static tail)."""
    nfull = S // CH
    tail = S - nfull * CH
    carry = init
    if nfull == 1 and tail == 0:
        return body(0, CH, carry)
    if nfull > 0:
        def step(c, carry):
            return body(pl.multiple_of(c * CH, CH), CH, carry)
        carry = lax.fori_loop(0, nfull, step, carry, unroll=(nfull <= 8))
    if tail:
        carry = body(nfull * CH, tail, carry)
    return carry


def _read_chunk(pred_ref, gt_ref, mask_ref, start, size):
    """Native-dtype VMEM chunk -> (f32 pred, f32 gt, bool valid)."""
    p = pred_ref[:, pl.ds(start, size), :].astype(jnp.float32)
    g = gt_ref[:, pl.ds(start, size), :].astype(jnp.float32)
    v = mask_ref[:, pl.ds(start, size), :] != 0
    return p, g, v


def _sublane_sum(x):
    # (tb, ch, 128) -> (tb, 1, 128): VPU adds across sublanes only.
    # NOTE: an MXU ones-contraction offload was considered (v7x VALU relief) but kept on the
    # VPU so the statistics accumulate in exact f32.
    return jnp.sum(x, axis=1, keepdims=True)


def _lane_sum(x):
    # (tb, 1, 128) -> (tb, 1, 1): one XLU cross-lane reduce per quantity.
    return jnp.sum(x, axis=2, keepdims=True)


def _ssi_stats(pred_ref, gt_ref, mask_ref):
    """Passes 1-2 over sublane chunks: per-batch valid count, shift and 1/scale."""
    tb, S, _ = pred_ref.shape
    CH = _chunk_sublanes(S, tb)
    zeros_l = jnp.zeros((tb, 1, _LANES), jnp.float32)

    # ---- pass 1: count + sums -> shifts ----------------------------------------------------
    def pass1(start, size, carry):
        cnt, sp, sg = carry
        p, g, v = _read_chunk(pred_ref, gt_ref, mask_ref, start, size)
        cnt = cnt + _sublane_sum(v.astype(jnp.float32))
        sp = sp + _sublane_sum(jnp.where(v, p, 0.0))
        sg = sg + _sublane_sum(jnp.where(v, g, 0.0))
        return cnt, sp, sg

    cnt_l, sp_l, sg_l = _fold_chunks(S, CH, pass1, (zeros_l, zeros_l, zeros_l))
    cnt = _lane_sum(cnt_l)                                            # (tb, 1, 1)
    inv_cnt = pl.reciprocal(jnp.maximum(cnt, 1.0), approx=False)
    # Lane-splat once, outside the chunk loops (avoid per-iteration broadcast_in_dim).
    p_shift = jnp.broadcast_to(_lane_sum(sp_l) * inv_cnt, (tb, 1, _LANES))
    g_shift = jnp.broadcast_to(_lane_sum(sg_l) * inv_cnt, (tb, 1, _LANES))

    # ---- pass 2: mean absolute deviation -> 1/scale ----------------------------------------
    def pass2(start, size, carry):
        sap, sag = carry
        p, g, v = _read_chunk(pred_ref, gt_ref, mask_ref, start, size)
        sap = sap + _sublane_sum(jnp.where(v, jnp.abs(p - p_shift), 0.0))
        sag = sag + _sublane_sum(jnp.where(v, jnp.abs(g - g_shift), 0.0))
        return sap, sag

    sap_l, sag_l = _fold_chunks(S, CH, pass2, (zeros_l, zeros_l))
    inv_ps = pl.reciprocal(jnp.maximum(_lane_sum(sap_l) * inv_cnt, 1e-6), approx=False)
    inv_gs = pl.reciprocal(jnp.maximum(_lane_sum(sag_l) * inv_cnt, 1e-6), approx=False)
    inv_ps = jnp.broadcast_to(inv_ps, (tb, 1, _LANES))
    inv_gs = jnp.broadcast_to(inv_gs, (tb, 1, _LANES))
    return CH, cnt, p_shift, g_shift, inv_ps, inv_gs


# --------------------------------------------------------------------------- kernels

def _ssi_dense_kernel(pred_ref, gt_ref, mask_ref, out_ref):
    """Dense masked |pred_n - gt_n| map, written chunk-by-chunk (lane-dense stores)."""
    _, S, _ = pred_ref.shape
    CH, _, p_shift, g_shift, inv_ps, inv_gs = _ssi_stats(pred_ref, gt_ref, mask_ref)

    def pass3(start, size, carry):
        p, g, v = _read_chunk(pred_ref, gt_ref, mask_ref, start, size)
        d = jnp.abs((p - p_shift) * inv_ps - (g - g_shift) * inv_gs)
        out_ref[:, pl.ds(start, size), :] = jnp.where(v, d, 0.0).astype(out_ref.dtype)
        return carry

    _fold_chunks(S, CH, pass3, 0)


def _ssi_reduce_kernel(pred_ref, gt_ref, mask_ref, sum_ref, cnt_ref):
    """Per-batch (sum of masked |pred_n - gt_n|, valid count) — no dense map in HBM."""
    tb, S, _ = pred_ref.shape
    CH, cnt, p_shift, g_shift, inv_ps, inv_gs = _ssi_stats(pred_ref, gt_ref, mask_ref)

    def pass3(start, size, carry):
        p, g, v = _read_chunk(pred_ref, gt_ref, mask_ref, start, size)
        d = jnp.abs((p - p_shift) * inv_ps - (g - g_shift) * inv_gs)
        return carry + _sublane_sum(jnp.where(v, d, 0.0))

    sd_l = _fold_chunks(S, CH, pass3, jnp.zeros((tb, 1, _LANES), jnp.float32))
    sum_ref[...] = _lane_sum(sd_l)
    cnt_ref[...] = cnt


# --------------------------------------------------------------------------- wrappers

def _prepare(pred, gt, mask):
    """Lane-dense (B, S, 128) slabs. Free reshape when H*W % 128 == 0 (no pad pass)."""
    B, H, W = pred.shape
    N = H * W
    S = -(-N // _LANES)
    pad = S * _LANES - N

    def pack(x, dtype):
        xf = x.reshape(B, N).astype(dtype)
        if pad:
            xf = jnp.pad(xf, ((0, 0), (0, pad)))
        return xf.reshape(B, S, _LANES)

    pred3 = pack(pred, pred.dtype)          # native dtype in HBM; f32 upcast happens in-kernel
    gt3 = pack(gt, gt.dtype)
    mask3 = pack(mask, jnp.int8)
    return pred3, gt3, mask3, dict(B=B, H=H, W=W, N=N, S=S)


def ssi_loss_dense(pred, gt, mask):
    """Dense (B, H, W) map of masked |pred_n - gt_n| (zeros at invalid pixels). Jittable."""
    assert pred.shape == gt.shape and pred.ndim == 3, f"Bad shape = {pred.shape}"
    pred3, gt3, mask3, meta = _prepare(pred, gt, mask)
    B, H, W, N, S = meta["B"], meta["H"], meta["W"], meta["N"], meta["S"]
    n_px = S * _LANES
    out_dtype = jnp.promote_types(pred.dtype, gt.dtype)
    io_bytes = (jnp.dtype(pred.dtype).itemsize + jnp.dtype(gt.dtype).itemsize + 1
                + jnp.dtype(out_dtype).itemsize)
    vmem_cap = _vmem_capacity()
    tb = _choose_tb(B, n_px, io_bytes, vmem_cap)

    spec = pl.BlockSpec((tb, S, _LANES), lambda b: (b, 0, 0))
    dense = pl.pallas_call(
        _ssi_dense_kernel,
        out_shape=jax.ShapeDtypeStruct((B, S, _LANES), out_dtype),
        grid=(B // tb,),
        in_specs=[spec, spec, spec],
        out_specs=spec,
        compiler_params=_compiler_params(tb, n_px, io_bytes, vmem_cap),
    )(pred3, gt3, mask3)
    return dense.reshape(B, n_px)[:, :N].reshape(B, H, W)


def ssi_loss_reduced(pred, gt, mask):
    """Per-batch (sum of masked |pred_n - gt_n|, valid count) without a dense output. Jittable."""
    assert pred.shape == gt.shape and pred.ndim == 3, f"Bad shape = {pred.shape}"
    pred3, gt3, mask3, meta = _prepare(pred, gt, mask)
    B, S = meta["B"], meta["S"]
    n_px = S * _LANES
    io_bytes = jnp.dtype(pred.dtype).itemsize + jnp.dtype(gt.dtype).itemsize + 1
    vmem_cap = _vmem_capacity()
    tb = _choose_tb(B, n_px, io_bytes, vmem_cap)

    in_spec = pl.BlockSpec((tb, S, _LANES), lambda b: (b, 0, 0))
    out_spec = pl.BlockSpec((tb, 1, 1), lambda b: (b, 0, 0))
    sums, cnts = pl.pallas_call(
        _ssi_reduce_kernel,
        out_shape=(jax.ShapeDtypeStruct((B, 1, 1), jnp.float32),
                   jax.ShapeDtypeStruct((B, 1, 1), jnp.float32)),
        grid=(B // tb,),
        in_specs=[in_spec, in_spec, in_spec],
        out_specs=(out_spec, out_spec),
        compiler_params=_compiler_params(tb, n_px, io_bytes, vmem_cap),
    )(pred3, gt3, mask3)
    return sums.reshape(B), cnts.reshape(B)


def depth_scale_shift_inv_loss(pred, gt, mask, reduction="none"):
    """Forward of DepthScaleShiftInvLoss. pred/gt: (B,H,W) float; mask: (B,H,W) bool."""
    assert pred.shape == gt.shape and pred.ndim == 3, f"Bad shape = {pred.shape}"
    if reduction == "none":
        dense = ssi_loss_dense(pred, gt, mask)
        # TODO(synk): torch returns the ragged 1-D tensor dist[mask]; its length is
        # data-dependent so it cannot be a fixed-shape Pallas output and this boolean gather is
        # not jittable. Jittable callers should consume ssi_loss_dense() + mask directly.
        return dense[jnp.asarray(mask, dtype=bool)]
    sums, cnts = ssi_loss_reduced(pred, gt, mask)
    total = jnp.sum(sums)
    count = jnp.sum(cnts)
    if reduction == "sum":
        return total
    if reduction == "mean":
        return jnp.where(count > 0, total / jnp.maximum(count, 1.0), 0.0)
    raise ValueError(f"bad reduction={reduction!r} mode")


# --------------------------------------------------------------------------- reference

def _reference_dense(pred, gt, mask):
    """Pure-numpy reference of normalize + distance (dense, masked-zeroed)."""
    pred = np.asarray(pred, np.float32)
    gt = np.asarray(gt, np.float32)
    m = np.asarray(mask, bool)
    out = np.zeros_like(pred)
    for b in range(pred.shape[0]):
        mb = m[b]
        ps = pred[b][mb].mean()
        pc = pred[b] - ps
        psc = np.abs(pc[mb]).mean()
        gs = gt[b][mb].mean()
        gc = gt[b] - gs
        gsc = np.abs(gc[mb]).mean()
        pn = pc / max(psc, 1e-6)
        gn = gc / max(gsc, 1e-6)
        out[b] = np.abs(pn - gn) * mb
    return out


if __name__ == "__main__":
    key = jax.random.PRNGKey(0)
    k1, k2, k3 = jax.random.split(key, 3)

    B, H, W = 2, 16, 16
    pred = jax.random.normal(k1, (B, H, W), dtype=jnp.float32) + 2.0
    gt = jax.random.normal(k2, (B, H, W), dtype=jnp.float32) * 0.5 + 1.5
    mask = jax.random.bernoulli(k3, p=0.7, shape=(B, H, W))
    mask = mask.at[:, 0, 0].set(True)   # every batch element has >= 1 valid pixel

    mask_np = np.asarray(mask)
    ref = _reference_dense(pred, gt, mask)
    ref_valid = ref[mask_np]

    # dense map correctness (kernel path for reduction='none')
    dense = ssi_loss_dense(pred, gt, mask)
    jax.block_until_ready(dense)
    np.testing.assert_allclose(np.asarray(dense), ref, rtol=2e-5, atol=5e-5)

    # reduction='none': compacted 1-D output like torch `x[mask]`
    dist = depth_scale_shift_inv_loss(pred, gt, mask, reduction="none")
    jax.block_until_ready(dist)
    assert dist.shape == (int(mask_np.sum()),)
    np.testing.assert_allclose(np.asarray(dist), ref_valid, rtol=2e-5, atol=5e-5)

    # reduced modes use the (B,1,1)-output reduce kernel (no dense map in HBM)
    s = depth_scale_shift_inv_loss(pred, gt, mask, reduction="sum")
    mn = depth_scale_shift_inv_loss(pred, gt, mask, reduction="mean")
    jax.block_until_ready((s, mn))
    np.testing.assert_allclose(np.asarray(s), ref_valid.sum(), rtol=1e-4, atol=1e-3)
    np.testing.assert_allclose(np.asarray(mn), ref_valid.mean(), rtol=1e-4, atol=1e-4)

    # native-dtype path: bf16 pred/gt stay bf16 in HBM and the dense map comes back bf16
    d_bf16 = ssi_loss_dense(pred.astype(jnp.bfloat16), gt.astype(jnp.bfloat16), mask)
    jax.block_until_ready(d_bf16)
    assert np.isfinite(np.asarray(d_bf16.astype(jnp.float32))).all()

    # Exercise the chunked multi-pass path (dynamic sublane offsets) at a small shape by
    # forcing a tiny per-chunk temp budget: S=128 sublanes -> 4 chunks of 32.
    _saved_chunk_bytes = _CHUNK_TEMP_BYTES
    _CHUNK_TEMP_BYTES = 16 * 1024
    try:
        B2, H2, W2 = 2, 128, 128
        kk1, kk2, kk3 = jax.random.split(jax.random.PRNGKey(1), 3)
        pred2 = jax.random.normal(kk1, (B2, H2, W2), dtype=jnp.float32) * 1.7 + 0.3
        gt2 = jax.random.normal(kk2, (B2, H2, W2), dtype=jnp.float32) + 1.0
        mask2 = jax.random.bernoulli(kk3, p=0.6, shape=(B2, H2, W2))
        mask2 = mask2.at[:, 0, 0].set(True)
        ref2 = _reference_dense(pred2, gt2, mask2)
        dense2 = ssi_loss_dense(pred2, gt2, mask2)
        jax.block_until_ready(dense2)
        np.testing.assert_allclose(np.asarray(dense2), ref2, rtol=5e-5, atol=2e-4)
        s2, c2 = ssi_loss_reduced(pred2, gt2, mask2)
        jax.block_until_ready((s2, c2))
        np.testing.assert_allclose(np.asarray(jnp.sum(s2)), ref2.sum(), rtol=2e-4, atol=1e-2)
        np.testing.assert_allclose(np.asarray(jnp.sum(c2)), np.asarray(mask2).sum(),
                                   rtol=0, atol=0.5)
    finally:
        _CHUNK_TEMP_BYTES = _saved_chunk_bytes

    print("KERNEL_OK")
</pallas_src>

<mosaic_0001>
module attributes {stable_mosaic.version = 11 : i64} {
  func.func @_ssi_dense_kernel(%arg0: i32, %arg1: memref<1x2x128xf32, #tpu.memory_space<vmem>>, %arg2: memref<1x2x128xf32, #tpu.memory_space<vmem>>, %arg3: memref<1x2x128xi8, #tpu.memory_space<vmem>>, %arg4: memref<1x2x128xf32, #tpu.memory_space<vmem>>) attributes {dimension_semantics = [#tpu.dimension_semantics<parallel>], iteration_bounds = array<i64: 2>, scalar_prefetch = 0 : i64, scratch_operands = 0 : i64, tpu.core_type = #tpu.core_type<tc>, window_params = [{transform_indices = @transform_0, window_bounds = array<i64: 1, 2, 128>}, {transform_indices = @transform_1, window_bounds = array<i64: 1, 2, 128>}, {transform_indices = @transform_2, window_bounds = array<i64: 1, 2, 128>}, {transform_indices = @transform_3, window_bounds = array<i64: 1, 2, 128>}]} {
    %cst = arith.constant 0.000000e+00 : f32
    %0 = vector.broadcast %cst : f32 to vector<1x1x128xf32>
    %c0 = arith.constant 0 : index
    %c0_0 = arith.constant 0 : index
    %c0_1 = arith.constant 0 : index
    %1 = vector.load %arg1[%c0, %c0_0, %c0_1] : memref<1x2x128xf32, #tpu.memory_space<vmem>>, vector<1x2x128xf32>
    %c0_2 = arith.constant 0 : index
    %c0_3 = arith.constant 0 : index
    %c0_4 = arith.constant 0 : index
    %2 = vector.load %arg2[%c0_2, %c0_3, %c0_4] : memref<1x2x128xf32, #tpu.memory_space<vmem>>, vector<1x2x128xf32>
    %c0_5 = arith.constant 0 : index
    %c0_6 = arith.constant 0 : index
    %c0_7 = arith.constant 0 : index
    %3 = vector.load %arg3[%c0_5, %c0_6, %c0_7] : memref<1x2x128xi8, #tpu.memory_space<vmem>>, vector<1x2x128xi8>
    %c0_i8 = arith.constant 0 : i8
    %4 = vector.broadcast %c0_i8 : i8 to vector<1x2x128xi8>
    %5 = arith.cmpi ne, %3, %4 : vector<1x2x128xi8>
    %6 = arith.extui %5 : vector<1x2x128xi1> to vector<1x2x128xi32>
    %7 = arith.sitofp %6 : vector<1x2x128xi32> to vector<1x2x128xf32>
    %cst_8 = arith.constant dense<0.000000e+00> : vector<1x128xf32>
    %8 = vector.multi_reduction <add>, %7, %cst_8 [1] : vector<1x2x128xf32> to vector<1x128xf32>
    %9 = vector.shape_cast %8 : vector<1x128xf32> to vector<1x1x128xf32>
    %10 = arith.addf %0, %9 : vector<1x1x128xf32>
    %cst_9 = arith.constant 0.000000e+00 : f32
    %11 = vector.broadcast %cst_9 : f32 to vector<1x2x128xf32>
    %12 = arith.select %5, %1, %11 : vector<1x2x128xi1>, vector<1x2x128xf32>
    %cst_10 = arith.constant dense<0.000000e+00> : vector<1x128xf32>
    %13 = vector.multi_reduction <add>, %12, %cst_10 [1] : vector<1x2x128xf32> to vector<1x128xf32>
    %14 = vector.shape_cast %13 : vector<1x128xf32> to vector<1x1x128xf32>
    %15 = arith.addf %0, %14 : vector<1x1x128xf32>
    %cst_11 = arith.constant 0.000000e+00 : f32
    %16 = vector.broadcast %cst_11 : f32 to vector<1x2x128xf32>
    %17 = arith.select %5, %2, %16 : vector<1x2x128xi1>, vector<1x2x128xf32>
    %cst_12 = arith.constant dense<0.000000e+00> : vector<1x128xf32>
    %18 = vector.multi_reduction <add>, %17, %cst_12 [1] : vector<1x2x128xf32> to vector<1x128xf32>
    %19 = vector.shape_cast %18 : vector<1x128xf32> to vector<1x1x128xf32>
    %20 = arith.addf %0, %19 : vector<1x1x128xf32>
    %cst_13 = arith.constant dense<0.000000e+00> : vector<1x1xf32>
    %21 = vector.multi_reduction <add>, %10, %cst_13 [2] : vector<1x1x128xf32> to vector<1x1xf32>
    %22 = vector.shape_cast %21 : vector<1x1xf32> to vector<1x1x1xf32>
    %cst_14 = arith.constant 1.000000e+00 : f32
    %23 = vector.broadcast %cst_14 : f32 to vector<1x1x1xf32>
    %24 = arith.maximumf %22, %23 : vector<1x1x1xf32>
    %25 = tpu.reciprocal %24 : vector<1x1x1xf32> -> vector<1x1x1xf32>
    %cst_15 = arith.constant dense<0.000000e+00> : vector<1x1xf32>
    %26 = vector.multi_reduction <add>, %15, %cst_15 [2] : vector<1x1x128xf32> to vector<1x1xf32>
    %27 = vector.shape_cast %26 : vector<1x1xf32> to vector<1x1x1xf32>
    %28 = arith.mulf %27, %25 : vector<1x1x1xf32>
    %29 = vector.shape_cast %28 : vector<1x1x1xf32> to vector<1x1x1xf32>
    %30 = vector.broadcast %29 : vector<1x1x1xf32> to vector<1x1x128xf32>
    %cst_16 = arith.constant dense<0.000000e+00> : vector<1x1xf32>
    %31 = vector.multi_reduction <add>, %20, %cst_16 [2] : vector<1x1x128xf32> to vector<1x1xf32>
    %32 = vector.shape_cast %31 : vector<1x1xf32> to vector<1x1x1xf32>
    %33 = arith.mulf %32, %25 : vector<1x1x1xf32>
    %34 = vector.shape_cast %33 : vector<1x1x1xf32> to vector<1x1x1xf32>
    %35 = vector.broadcast %34 : vector<1x1x1xf32> to vector<1x1x128xf32>
    %c0_17 = arith.constant 0 : index
    %c0_18 = arith.constant 0 : index
    %c0_19 = arith.constant 0 : index
    %36 = vector.load %arg1[%c0_17, %c0_18, %c0_19] : memref<1x2x128xf32, #tpu.memory_space<vmem>>, vector<1x2x128xf32>
    %c0_20 = arith.constant 0 : index
    %c0_21 = arith.constant 0 : index
    %c0_22 = arith.constant 0 : index
    %37 = vector.load %arg2[%c0_20, %c0_21, %c0_22] : memref<1x2x128xf32, #tpu.memory_space<vmem>>, vector<1x2x128xf32>
    %c0_23 = arith.constant 0 : index
    %c0_24 = arith.constant 0 : index
    %c0_25 = arith.constant 0 : index
    %38 = vector.load %arg3[%c0_23, %c0_24, %c0_25] : memref<1x2x128xi8, #tpu.memory_space<vmem>>, vector<1x2x128xi8>
    %c0_i8_26 = arith.constant 0 : i8
    %39 = vector.broadcast %c0_i8_26 : i8 to vector<1x2x128xi8>
    %40 = arith.cmpi ne, %38, %39 : vector<1x2x128xi8>
    %41 = vector.broadcast %30 : vector<1x1x128xf32> to vector<1x2x128xf32>
    %42 = arith.subf %36, %41 : vector<1x2x128xf32>
    %43 = math.absf %42 : vector<1x2x128xf32>
    %cst_27 = arith.constant 0.000000e+00 : f32
    %44 = vector.broadcast %cst_27 : f32 to vector<1x2x128xf32>
    %45 = arith.select %40, %43, %44 : vector<1x2x128xi1>, vector<1x2x128xf32>
    %cst_28 = arith.constant dense<0.000000e+00> : vector<1x128xf32>
    %46 = vector.multi_reduction <add>, %45, %cst_28 [1] : vector<1x2x128xf32> to vector<1x128xf32>
    %47 = vector.shape_cast %46 : vector<1x128xf32> to vector<1x1x128xf32>
    %48 = arith.addf %0, %47 : vector<1x1x128xf32>
    %49 = vector.broadcast %35 : vector<1x1x128xf32> to vector<1x2x128xf32>
    %50 = arith.subf %37, %49 : vector<1x2x128xf32>
    %51 = math.absf %50 : vector<1x2x128xf32>
    %cst_29 = arith.constant 0.000000e+00 : f32
    %52 = vector.broadcast %cst_29 : f32 to vector<1x2x128xf32>
    %53 = arith.select %40, %51, %52 : vector<1x2x128xi1>, vector<1x2x128xf32>
    %cst_30 = arith.constant dense<0.000000e+00> : vector<1x128xf32>
    %54 = vector.multi_reduction <add>, %53, %cst_30 [1] : vector<1x2x128xf32> to vector<1x128xf32>
    %55 = vector.shape_cast %54 : vector<1x128xf32> to vector<1x1x128xf32>
    %56 = arith.addf %0, %55 : vector<1x1x128xf32>
    %cst_31 = arith.constant dense<0.000000e+00> : vector<1x1xf32>
    %57 = vector.multi_reduction <add>, %48, %cst_31 [2] : vector<1x1x128xf32> to vector<1x1xf32>
    %58 = vector.shape_cast %57 : vector<1x1xf32> to vector<1x1x1xf32>
    %59 = arith.mulf %58, %25 : vector<1x1x1xf32>
    %cst_32 = arith.constant 9.99999997E-7 : f32
    %60 = vector.broadcast %cst_32 : f32 to vector<1x1x1xf32>
    %61 = arith.maximumf %59, %60 : vector<1x1x1xf32>
    %62 = tpu.reciprocal %61 : vector<1x1x1xf32> -> vector<1x1x1xf32>
    %cst_33 = arith.constant dense<0.000000e+00> : vector<1x1xf32>
    %63 = vector.multi_reduction <add>, %56, %cst_33 [2] : vector<1x1x128xf32> to vector<1x1xf32>
    %64 = vector.shape_cast %63 : vector<1x1xf32> to vector<1x1x1xf32>
    %65 = arith.mulf %64, %25 : vector<1x1x1xf32>
    %cst_34 = arith.constant 9.99999997E-7 : f32
    %66 = vector.broadcast %cst_34 : f32 to vector<1x1x1xf32>
    %67 = arith.maximumf %65, %66 : vector<1x1x1xf32>
    %68 = tpu.reciprocal %67 : vector<1x1x1xf32> -> vector<1x1x1xf32>
    %69 = vector.shape_cast %62 : vector<1x1x1xf32> to vector<1x1x1xf32>
    %70 = vector.broadcast %69 : vector<1x1x1xf32> to vector<1x1x128xf32>
    %71 = vector.shape_cast %68 : vector<1x1x1xf32> to vector<1x1x1xf32>
    %72 = vector.broadcast %71 : vector<1x1x1xf32> to vector<1x1x128xf32>
    %c0_35 = arith.constant 0 : index
    %c0_36 = arith.constant 0 : index
    %c0_37 = arith.constant 0 : index
    %73 = vector.load %arg1[%c0_35, %c0_36, %c0_37] : memref<1x2x128xf32, #tpu.memory_space<vmem>>, vector<1x2x128xf32>
    %c0_38 = arith.constant 0 : index
    %c0_39 = arith.constant 0 : index
    %c0_40 = arith.constant 0 : index
    %74 = vector.load %arg2[%c0_38, %c0_39, %c0_40] : memref<1x2x128xf32, #tpu.memory_space<vmem>>, vector<1x2x128xf32>
    %c0_41 = arith.constant 0 : index
    %c0_42 = arith.constant 0 : index
    %c0_43 = arith.constant 0 : index
    %75 = vector.load %arg3[%c0_41, %c0_42, %c0_43] : memref<1x2x128xi8, #tpu.memory_space<vmem>>, vector<1x2x128xi8>
    %c0_i8_44 = arith.constant 0 : i8
    %76 = vector.broadcast %c0_i8_44 : i8 to vector<1x2x128xi8>
    %77 = arith.cmpi ne, %75, %76 : vector<1x2x128xi8>
    %78 = vector.broadcast %30 : vector<1x1x128xf32> to vector<1x2x128xf32>
    %79 = arith.subf %73, %78 : vector<1x2x128xf32>
    %80 = vector.broadcast %70 : vector<1x1x128xf32> to vector<1x2x128xf32>
    %81 = arith.mulf %79, %80 : vector<1x2x128xf32>
    %82 = vector.broadcast %35 : vector<1x1x128xf32> to vector<1x2x128xf32>
    %83 = arith.subf %74, %82 : vector<1x2x128xf32>
    %84 = vector.broadcast %72 : vector<1x1x128xf32> to vector<1x2x128xf32>
    %85 = arith.mulf %83, %84 : vector<1x2x128xf32>
    %86 = arith.subf %81, %85 : vector<1x2x128xf32>
    %87 = math.absf %86 : vector<1x2x128xf32>
    %cst_45 = arith.constant 0.000000e+00 : f32
    %88 = vector.broadcast %cst_45 : f32 to vector<1x2x128xf32>
    %89 = arith.select %77, %87, %88 : vector<1x2x128xi1>, vector<1x2x128xf32>
    %c0_46 = arith.constant 0 : index
    %c0_47 = arith.constant 0 : index
    %c0_48 = arith.constant 0 : index
    %90 = vector.load %arg4[%c0_46, %c0_47, %c0_48] : memref<1x2x128xf32, #tpu.memory_space<vmem>>, vector<1x2x128xf32>
    tpu.vector_store %arg4[%c0_46, %c0_47, %c0_48], %89 {strides = array<i32>} : memref<1x2x128xf32, #tpu.memory_space<vmem>>, vector<1x2x128xf32>,
    return
  }
  func.func @transform_0(%arg0: i32) -> (i32, i32, i32) {
    %c0_i32 = arith.constant 0 : i32
    %c0_i32_0 = arith.constant 0 : i32
    %c0_i32_1 = arith.constant 0 : i32
    return %arg0, %c0_i32, %c0_i32_0 : i32, i32, i32
  }
  func.func @transform_1(%arg0: i32) -> (i32, i32, i32) {
    %c0_i32 = arith.constant 0 : i32
    %c0_i32_0 = arith.constant 0 : i32
    %c0_i32_1 = arith.constant 0 : i32
    return %arg0, %c0_i32, %c0_i32_0 : i32, i32, i32
  }
  func.func @transform_2(%arg0: i32) -> (i32, i32, i32) {
    %c0_i32 = arith.constant 0 : i32
    %c0_i32_0 = arith.constant 0 : i32
    %c0_i32_1 = arith.constant 0 : i32
    return %arg0, %c0_i32, %c0_i32_0 : i32, i32, i32
  }
  func.func @transform_3(%arg0: i32) -> (i32, i32, i32) {
    %c0_i32 = arith.constant 0 : i32
    %c0_i32_0 = arith.constant 0 : i32
    %c0_i32_1 = arith.constant 0 : i32
    return %arg0, %c0_i32, %c0_i32_0 : i32, i32, i32
  }
}

</mosaic_0001>

<bundles_post_ra>
// kernel: tpu_custom_call.1
= control target key start
LH: loop header
LB: loop body
LE: loop exit
PB: predicated region body
PF: predicated region fallthrough
CT: control target
= control target key end

     0   :  { %8 = vsyncpa [#allocation3], 0  ;;  %s896_s0 = inlined_call_operand.hbm [shape: f32[2,2,128], index: 0, kind: input, shape index: {}]   ;;  %s897_s1 = inlined_call_operand.hbm [shape: f32[2,2,128], index: 1, kind: input, shape index: {}]   ;;  %s898_s2 = inlined_call_operand.vmem [shape: s8[2,2,128], index: 2, kind: input, shape index: {}]   ;;  %s899_s3 = inlined_call_operand.hbm [shape: f32[2,2,128], index: 3, kind: output, shape index: {}]  }
   0x1   :  { %10 = vsyncpa [#allocation3 + $0x1], 0 }
   0x2   :  { %11 = vsyncpa [#allocation6], 0 }
   0x3   :  { %13 = vsyncpa [#allocation6 + $0x1], 0 }
   0x4   :  { %14 = vsyncpa [#allocation4], 0 }
   0x5   :  { %16 = vsyncpa [#allocation4 + $0x1], 0  ;;  %s665_s12 = smov 0   ;;  %s667_s13 = smov 0  }
   0x6   :  { %s669_s14 = smov 0   ;;  %s671_s15 = smov 0  }
   0x7 LB: > { %s686_s16 = sadd.s32 4294967295, %s638_s15   ;;  %s439_s17 = sadd.s32 4294967294, %s638_s15   ;;  %s638_s15 = sphi %s671_s15, %s920_s15   ;;  %s634_s14 = sphi %s669_s14, %s919_s14   ;;  %s630_s13 = sphi %s667_s13, %s918_s13   ;;  %s626_s12 = sphi %s665_s12, %s917_s12  }
   0x8   : > { %s690_s18 = sadd.s32 1, %s638_s15   ;;  %s29_s19 = sadd.s32 1, %s634_s14 }
   0x9   : > { %s26_s20 = ssub.s32 %s638_s15, %s690_s18  ;;  %p36_p0 = scmp.ne.s32.totalorder %s634_s14, %s630_s13 }
   0xa   : > { %p27_p1 = scmp.eq.s32.totalorder %s26_s20, 0  ;;  %p37_p2 = scmp.eq.s32.totalorder %s638_s15, 0 }
   0xb   : > { %p42_p3 = scmp.ne.s32.totalorder %s630_s13, %s626_s12  ;;  %p43_p4 = scmp.eq.s32.totalorder %s686_s16, 0 }
   0xc   : > { %s702_s21 = scalar_select %p27_p1, %s634_s14, %s29_s19  }
   0xd   : > { %p704_p5 = por %p37_p2, %p36_p0  ;;  %p708_p6 = por %p43_p4, %p42_p3 }
   0xe   : > { %p118_p7 = scmp.eq.s32.totalorder %s686_s16, 1  ;;  %p124_p8 = scmp.eq.s32.totalorder %s439_s17, 1 }
   0xf   : > { %s903_s23 = scalar_select %p708_p6, 1, 0 }
  0x10   : > { %p472_p10 = scmp.lt.s32.totalorder %s638_s15, 2  ;;  %p715_p11 = por %p118_p7, %p36_p0 }
  0x11   : > { %p719_p12 = por %p124_p8, %p42_p3  ;;  %s724_s26 = sand.u32 1, %s634_s14  }
  0x12   : > { %s904_s24 = scalar_select %p715_p11, 1, 0 }
  0x13   : > { %s905_s25 = scalar_select %p719_p12, 1, 0 }
  0x14   : > { %s443_s27 = sshll.u32 %s638_s15, 5  ;;  %s442_s28 = sshll.u32 %s724_s26, 1 }
  0x15   : > { %s733_s4 = scalar_lea.hbm %s896_s0, %s443_s27  ;;  %s148_s5 = scalar_lea.vmem [#allocation2], %s442_s28 }
  0x16   : > { %s155_s6 = sshll.u32 %s148_s5, 4  ;;  %p739_p13 = pnand %p472_p10, %p704_p5  ;;  %s743_s6 = int_to_ptr.vmem [resolvable:$true] %s155_s6 }
  0x17   : > { %s145_s8 = scalar_lea.sflag [#allocation3], %s724_s26  ;;  %s514_s9 = scalar_lea.hbm %s733_s4, 32 }
  0x18   : > { %p515_p2 = scmp.ne.s32.totalorder %s733_s4, %s514_s9  ;;  %p516_p3 = pneg %p739_p13 }
  0x19   : > { %s519_s17 = scalar_lea.hbm %s896_s0, 64  ;;  %p520_p5 = scmp.lt.s32.totalorder %s733_s4, %s896_s0 }
  0x1a   : > { %p517_p4 = pnand %p516_p3, %p515_p2  ;;  %p521_p8 = scmp.lt.s32.totalorder %s519_s17, %s514_s9 }
  0x1c   : > { %p518_p7 = pneg %p517_p4  ;;  %p522_p10 = por %p521_p8, %p520_p5 }
  0x1e   : > { %p523_p9 = pnand %p522_p10, %p518_p7 }
  0x20   : > { %526 = shalt.err (!%p523_p9)
}
  0x21   : > { %s527_s22 = scalar_lea.vmem %s743_s6, 32  ;;  %s640_s29 = smov [#allocation2]  }
  0x22   : > { %p528_p0 = scmp.ne.s32.totalorder %s743_s6, %s527_s22  ;;  %s532_s30 = sshll.u32 %s640_s29, 4  ;;  %s533_s30 = int_to_ptr.vmem [resolvable:$false] %s532_s30 }
  0x23   : > { %s534_s5 = scalar_lea.vmem %s533_s30, 64  ;;  %p535_p1 = scmp.lt.s32.totalorder %s743_s6, %s533_s30 }
  0x24   : > { %p530_p2 = pnand %p528_p0, %p516_p3  ;;  %p536_p12 = scmp.lt.s32.totalorder %s534_s5, %s527_s22 }
  0x26   : > { %p531_p4 = pneg %p530_p2  ;;  %p537_p11 = por %p536_p12, %p535_p1 }
  0x28   : > { %p538_p5 = pnand %p537_p11, %p531_p4 }
  0x2a   : > { %541 = shalt.err (!%p538_p5)
}
  0x2b   : > { %464 = dma.hbm_to_vmem [thread:$0]  (!%p739_p13), %s733_s4, 32, %s743_s6, %s145_s8  }
  0x2c   : > { %p907_p9 = scmp.lt.s32.totalorder %s638_s15, 3  ;;  %p908_p0 = scmp.ge.s32.totalorder %s638_s15, 1 }
  0x2d   : > { %s785_s17 = scalar_lea.hbm %s897_s1, %s443_s27  ;;  %s166_s19 = scalar_lea.vmem [#allocation5], %s442_s28 }
  0x2e   : > { %p776_p7 = pnand %p908_p0, %p907_p9  ;;  %s173_s20 = sshll.u32 %s166_s19, 4  ;;  %s174_s20 = int_to_ptr.vmem [resolvable:$true] %s173_s20 }
  0x2f   : > { %s163_s4 = scalar_lea.sflag [#allocation6], %s724_s26  ;;  %s542_s6 = scalar_lea.hbm %s785_s17, 32 }
  0x30   : > { %s909_s9 = scalar_select %p776_p7, 1, 0 }
  0x31   : > { %p543_p11 = scmp.ne.s32.totalorder %s785_s17, %s542_s6  ;;  %s547_s29 = scalar_lea.hbm %s897_s1, 64 }
  0x32   : > { %p548_p8 = scmp.lt.s32.totalorder %s785_s17, %s897_s1  ;;  %p549_p10 = scmp.lt.s32.totalorder %s547_s29, %s542_s6 }
  0x33   : > { %p545_p12 = pnand %p543_p11, %p516_p3 }
  0x34   : > { %p550_p2 = por %p549_p10, %p548_p8 }
  0x35   : > { %p546_p1 = pneg %p545_p12 }
  0x37   : > { %p551_p4 = pnand %p550_p2, %p546_p1 }
  0x39   : > { %554 = shalt.err (!%p551_p4)
}
  0x3a   : > { %s555_s28 = scalar_lea.vmem %s174_s20, 32  ;;  %s641_s26 = smov [#allocation5]  }
  0x3b   : > { %p556_p5 = scmp.ne.s32.totalorder %s174_s20, %s555_s28  ;;  %s560_s5 = sshll.u32 %s641_s26, 4  ;;  %s561_s5 = int_to_ptr.vmem [resolvable:$false] %s560_s5 }
  0x3c   : > { %s562_s10 = scalar_lea.vmem %s561_s5, 64  ;;  %p563_p11 = scmp.lt.s32.totalorder %s174_s20, %s561_s5 }
  0x3d   : > { %p558_p9 = pnand %p556_p5, %p516_p3  ;;  %p564_p12 = scmp.lt.s32.totalorder %s562_s10, %s555_s28 }
  0x3f   : > { %p559_p0 = pneg %p558_p9  ;;  %p565_p6 = por %p564_p12, %p563_p11 }
  0x41   : > { %p566_p7 = pnand %p565_p6, %p559_p0 }
  0x43   : > { %569 = shalt.err (!%p566_p7)
}
  0x44   : > { %467 = dma.hbm_to_vmem [thread:$0]  (!%p739_p13), %s785_s17, 32, %s174_s20, %s163_s4  }
  0x45   : > { %p910_p1 = scmp.ne.s32.totalorder %s909_s9, 0 }
  0x46   : > { %s811_s11 = sand.u32 (!%p910_p1), 1, %s630_s13   ;;  %p911_p6 = scmp.ne.s32.totalorder (!%p910_p1), %s903_s23, 0 }
  0x47   : > { %188 = sbr.rel (%p910_p1) target bundleno = 455 (0x1c7), region = 32  ;;  %s814_s19 = sshll.u32 (!%p910_p1), %s811_s11, 1 }
  0x48   : > { %s191_s6 = scalar_lea.sflag (!%p910_p1), [#allocation3], %s811_s11  ;;  %s194_s8 = scalar_lea.vmem (!%p910_p1), [#allocation2], %s814_s19 }
  0x4c   : > { %613 = dma.done.wait (%p911_p6), %s191_s6, 32  }
  0x4d   : > { %615 = vsyncadd (%p911_p6), %s191_s6, 4294967264  ;;  %s200_s7 = scalar_lea.sflag [#allocation6], %s811_s11  ;;  %s203_s9 = scalar_lea.vmem [#allocation5], %s814_s19 }
  0x4e   : > { %617 = dma.done.wait (%p911_p6), %s200_s7, 32  }
  0x4f   : > { %619 = vsyncadd (%p911_p6), %s200_s7, 4294967264  ;;  %p234_p13 = scmp.lt.s32.totalorder %s686_s16, 1  ;;  %v642_v1 = vmov 0   ;;  %v240_v4 = vld [vmem:[%s203_s9] sm:$0x3]  ;;  %vm248_vm1 = vcmask 1041408  }
  0x50   : > { %v239_v5 = vld [vmem:[%s194_s8] sm:$0x3]  ;;  %v643_v7 = vmov 0.0   ;;  %s452_s23 = sshll.u32 %s686_s16, 5  ;;  %s233_s29 = scalar_lea.vmem [#allocation7], %s814_s19 }
  0x51   : > { %s235_s17 = scalar_select %p234_p13, %s686_s16, 1 }
  0x52   : > { %s337_s27 = sshll.u32 %s233_s29, 4  ;;  %s857_s26 = scalar_lea.hbm %s899_s3, %s452_s23  ;;  %s338_s27 = int_to_ptr.vmem [resolvable:$true] %s337_s27 }
  0x53   : > { %s236_s22 = scalar_lea.vmem %s898_s2, %s235_s17  ;;  %s324_s5 = scalar_lea.sflag [#allocation4], %s811_s11 }
  0x54   : > { %v241_v0 = vld [vmem:[%s236_s22] sm:$0x1]  ;;  %s570_s10 = scalar_lea.vmem %s338_s27, 32  ;;  %p914_p7 = scmp.ne.s32.totalorder %s904_s24, 0 }
  0x55   : > { %vm242_vm0 = vnez %v241_v0  ;;  %p571_p3 = scmp.ne.s32.totalorder %s338_s27, %s570_s10  ;;  %s644_s16 = smov [#allocation7]  }
  0x56   : > { %v243_v2 = vsel %vm242_vm0, 16843009, %v642_v1  ;;  %s574_s19 = sshll.u32 %s644_s16, 4  ;;  %s575_s19 = int_to_ptr.vmem [resolvable:$false] %s574_s19 }
  0x57   : > { %v244_v3 = vunpack.c.0.s8 %v243_v2  ;;  %p572_p8 = pnand %p571_p3, %p914_p7  ;;  %s576_s6 = scalar_lea.vmem %s575_s19, 64 }
  0x58   : > { %p577_p2 = scmp.lt.s32.totalorder %s338_s27, %s575_s19  ;;  %p578_p4 = scmp.lt.s32.totalorder %s576_s6, %s570_s10 }
  0x59   : > { %vm833_vm2 = vcmp.ne.s32.totalorder %v244_v3, 0  ;;  %p573_p10 = pneg %p572_p8 }
  0x5a   : > { %v450_v8 = vsel %vm833_vm2, 1.0, %v643_v7  ;;  %v266_v9 = vsel %vm833_vm2, %v240_v4, 0.0  ;;  %v257_v10 = vsel %vm833_vm2, %v239_v5, 0.0  ;;  %p579_p5 = por %p578_p4, %p577_p2 }
  0x5b   : > { %v249_v11 = vsel %vm248_vm1, %v450_v8, 0.0  ;;  %v267_v12 = vsel %vm248_vm1, %v266_v9, 0.0  ;;  %v258_v13 = vsel %vm248_vm1, %v257_v10, 0.0 }
  0x5c   : > { %v250_v14 = vrot.slane %v249_v11, 4  ;;  %v268_v15 = vrot.slane %v267_v12, 4  ;;  %v259_v16 = vrot.slane %v258_v13, 4  ;;  %p580_p9 = pnand %p579_p5, %p573_p10 }
  0x5e   : > { %v251_v17 = vadd.f32 %v250_v14, %v249_v11  ;;  %v269_v18 = vadd.f32 %v268_v15, %v267_v12  ;;  %v260_v19 = vadd.f32 %v259_v16, %v258_v13 }
  0x60   : > { %v252_v20 = vrot.slane %v251_v17, 2  ;;  %v270_v21 = vrot.slane %v269_v18, 2  ;;  %v261_v22 = vrot.slane %v260_v19, 2 }
  0x62   : > { %v253_v23 = vadd.f32 %v252_v20, %v251_v17  ;;  %v271_v24 = vadd.f32 %v270_v21, %v269_v18  ;;  %v262_v25 = vadd.f32 %v261_v22, %v260_v19 }
  0x64   : > { %v254_v26 = vrot.slane %v253_v23, 1  ;;  %v272_v27 = vrot.slane %v271_v24, 1  ;;  %v263_v28 = vrot.slane %v262_v25, 1 }
  0x66   : > { %v255_v29 = vadd.f32 %v254_v26, %v253_v23  ;;  %v273_v30 = vadd.f32 %v272_v27, %v271_v24  ;;  %v264_v31 = vadd.f32 %v263_v28, %v262_v25 }
  0x68   : > { %275 = vadd.xlane.f32.xlu0 %v255_v29  ;;  %282 = vadd.xlane.f32.xlu1 %v273_v30 }
  0x6c   : > { %279 = vadd.xlane.f32.xlu0 %v264_v31 }
  0xf1   : > { %v276_v32 = vpop.xlane.xlu0 %275  ;;  %v283_v34 = vpop.xlane.xlu1 %282 }
  0xf2   : > { %v277_v33 = vmax.f32 %v276_v32, 1.0 }
  0xf4   : > { %508 = vrcp.f32 %v277_v33 }
  0xf5   : > { %v280_v35 = vpop.xlane.xlu0 %279 }
 0x101   : > { %v509_v36 = vpop.eup %508 }
 0x102   : > { %v284_v37 = vmul.f32 %v509_v36, %v283_v34  ;;  %v281_v38 = vmul.f32 %v509_v36, %v280_v35 }
 0x104   : > { %v296_v39 = vsub.f32 %v240_v4, %v284_v37  ;;  %v285_v40 = vsub.f32 %v239_v5, %v281_v38 }
 0x106   : > { %v297_v41 = vand.u32 2147483647, %v296_v39  ;;  %v286_v42 = vand.u32 2147483647, %v285_v40 }
 0x108   : > { %v298_v43 = vsel %vm833_vm2, %v297_v41, 0.0  ;;  %v287_v44 = vsel %vm833_vm2, %v286_v42, 0.0 }
 0x109   : > { %v299_v45 = vsel %vm248_vm1, %v298_v43, 0.0  ;;  %v288_v46 = vsel %vm248_vm1, %v287_v44, 0.0 }
 0x10a   : > { %v300_v47 = vrot.slane %v299_v45, 4  ;;  %v289_v48 = vrot.slane %v288_v46, 4 }
 0x10c   : > { %v301_v49 = vadd.f32 %v300_v47, %v299_v45  ;;  %v290_v50 = vadd.f32 %v289_v48, %v288_v46 }
 0x10e   : > { %v302_v51 = vrot.slane %v301_v49, 2  ;;  %v291_v52 = vrot.slane %v290_v50, 2 }
 0x110   : > { %v303_v53 = vadd.f32 %v302_v51, %v301_v49  ;;  %v292_v54 = vadd.f32 %v291_v52, %v290_v50 }
 0x112   : > { %v304_v55 = vrot.slane %v303_v53, 1  ;;  %v293_v56 = vrot.slane %v292_v54, 1 }
 0x114   : > { %v305_v57 = vadd.f32 %v304_v55, %v303_v53  ;;  %v294_v58 = vadd.f32 %v293_v56, %v292_v54 }
 0x116   : > { %312 = vadd.xlane.f32.xlu0 %v305_v57  ;;  %307 = vadd.xlane.f32.xlu1 %v294_v58 }
 0x19f   : > { %v308_v59 = vpop.xlane.xlu1 %307  ;;  %v313_v60 = vpop.xlane.xlu0 %312 }
 0x1a0   : > { %v309_v61 = vmul.f32 %v509_v36, %v308_v59  ;;  %v314_v62 = vmul.f32 %v509_v36, %v313_v60 }
 0x1a2   : > { %v310_v63 = vmax.f32 %v309_v61, 1e-06  ;;  %v315_v0 = vmax.f32 %v314_v62, 1e-06 }
 0x1a4   : > { %510 = vrcp.f32 %v310_v63 }
 0x1a5   : > { %512 = vrcp.f32 %v315_v0 }
 0x1b1   : > { %v511_v1 = vpop.eup %510 }
 0x1b2   : > { %v513_v2 = vpop.eup %512  ;;  %v317_v3 = vmul.f32 %v511_v1, %v285_v40 }
 0x1b3   : > { %v318_v4 = vmul.f32 %v513_v2, %v296_v39 }
 0x1b5   : > { %v319_v5 = vsub.f32 %v317_v3, %v318_v4 }
 0x1b7   : > { %v320_v7 = vand.u32 2147483647, %v319_v5 }
 0x1b9   : > { %v321_v8 = vsel %vm833_vm2, %v320_v7, 0.0 }
 0x1ba   : > { %322 = vst [vmem:[%s233_s29] sm:$0x3] %v321_v8 }
 0x1bb   : > { %583 = shalt.err (!%p580_p9)
}
 0x1bc   : > { %s584_s8 = scalar_lea.hbm %s857_s26, 32  ;;  %s588_s9 = scalar_lea.hbm %s899_s3, 64 }
 0x1bd   : > { %p585_p0 = scmp.ne.s32.totalorder %s857_s26, %s584_s8  ;;  %p589_p1 = scmp.lt.s32.totalorder %s857_s26, %s899_s3 }
 0x1be   : > { %p590_p6 = scmp.lt.s32.totalorder %s588_s9, %s584_s8 }
 0x1bf   : > { %p586_p11 = pnand %p585_p0, %p914_p7 }
 0x1c0   : > { %p591_p13 = por %p590_p6, %p589_p1 }
 0x1c1   : > { %p587_p12 = pneg %p586_p11 }
 0x1c3   : > { %p592_p3 = pnand %p591_p13, %p587_p12 }
 0x1c5   : > { %595 = shalt.err (!%p592_p3)
}
 0x1c6   : > { %459 = dma.vmem_to_hbm [thread:$0]  (%p914_p7), %s338_s27, 32, %s857_s26, %s324_s5  }
 0x1c7 PF: > { %s349_s4 = sand.u32 1, %s626_s12   ;;  %p915_p8 = scmp.ne.s32.totalorder %s905_s25, 0 }
 0x1c8   : > { %p916_p10 = scmp.ge.s32.totalorder %s638_s15, 2  ;;  %s350_s22 = scalar_lea.sflag [#allocation4], %s349_s4 }
 0x1ca   : > { %p469_p2 = pnand %p916_p10, %p915_p8 }
 0x1cc   : > { %p470_p4 = pneg %p469_p2 }
 0x1ce   : > { %621 = dma.done.wait (%p470_p4), %s350_s22, 32  }
 0x1cf   : > { %623 = vsyncadd (%p470_p4), %s350_s22, 4294967264  ;;  %p19_p5 = scmp.ge.s32.totalorder %s690_s18, 4   ;;  %s917_s12 = smov %s630_s13 }
 0x1d0   : > { %s918_s13 = smov %s634_s14  ;;  %s919_s14 = smov %s702_s21 }
 0x1d1   : > { %s920_s15 = smov %s690_s18  ;;  %21 = sbr.rel (!%p19_p5) target bundleno = 7 (0x7), region = 93 }
 0x1d6   :  { %355 = vsyncpa [#allocation3], 1 }
 0x1d7   :  { %357 = vsyncpa [#allocation3 + $0x1], 1 }
 0x1d8   :  { %358 = vsyncpa [#allocation6], 1 }
 0x1d9   :  { %360 = vsyncpa [#allocation6 + $0x1], 1 }
 0x1da   :  { %361 = vsyncpa [#allocation4], 1 }
 0x1db   :  { %363 = vsyncpa [#allocation4 + $0x1], 1 }

</bundles_post_ra>
